<compile_context>
chip_gen: v6e
topology: v6e:2x2x1
jax: 0.10.0
libtpu: 0.0.40
codegen_flags: <defaults>
</compile_context>

<pallas_src>
import functools

import jax
import jax.numpy as jnp
from jax import lax
from jax.experimental import pallas as pl
from jax.experimental.pallas import tpu as pltpu


# ----------------------------------------------------------------------------- kernels
def _lin0_kernel(params_ref, x_ref, o_ref, *, K, N):
    """y[n, m] = sum_k W[n,k] * x[k, m] + b[n].

    params_ref: SMEM f32[K*N + N]   (W^T row-major, then bias)
    x_ref:      VMEM f32[K, M]      (observations, lane-dense over batch)
    o_ref:      VMEM f32[N, M]
    """
    rows = []
    for n in range(N):
        acc = params_ref[0 * N + n] * x_ref[0:1, :]
        for k in range(1, K):
            acc = acc + params_ref[k * N + n] * x_ref[k:k + 1, :]
        acc = acc + params_ref[K * N + n]                       # bias (scalar broadcast)
        rows.append(acc)
    o_ref[...] = jnp.concatenate(rows, axis=0)                  # single [N, M] store


def _lin_t_kernel(params_ref, obs_ref, x_ref, o_ref, *, B, P, Kp, Ko, N):
    """Fused cat([prev, obs]) @ Wt^T + b, lane-dense over B*P.

    params_ref: SMEM f32[Kp*N + Ko*N + N]  (wp row-major, wo row-major, bias)
    obs_ref:    SMEM f32[B*Ko]             (observation at time t, flattened)
    x_ref:      VMEM f32[Kp, B*P]          (previous latents)
    o_ref:      VMEM f32[N, B*P]
    """
    M = B * P
    wo_off = Kp * N
    b_off = wo_off + Ko * N
    # lane m corresponds to (batch = m // P, particle = m % P)
    batch_of_lane = lax.broadcasted_iota(jnp.int32, (1, M), 1) // P
    rows = []
    for n in range(N):
        # previous-latent contribution: Kp scalar-x-vector FMAs
        acc = params_ref[0 * N + n] * x_ref[0:1, :]
        for k in range(1, Kp):
            acc = acc + params_ref[k * N + n] * x_ref[k:k + 1, :]
        acc = acc + params_ref[b_off + n]                       # bias (scalar broadcast)
        # observation contribution: per-batch scalar, broadcast over that batch's lanes
        for b in range(B):
            c = params_ref[wo_off + 0 * N + n] * obs_ref[b * Ko + 0]
            for j in range(1, Ko):
                c = c + params_ref[wo_off + j * N + n] * obs_ref[b * Ko + j]
            acc = acc + jnp.where(batch_of_lane == b, c, jnp.float32(0.0))
        rows.append(acc)
    o_ref[...] = jnp.concatenate(rows, axis=0)                  # single [N, M] store


# ----------------------------------------------------------------------------- jitted wrappers
@jax.jit
def proposal_lin0(obs0, params0):
    """loc = obs0 @ W0^T + b0 ; obs0: [M, 6], params0: f32[6*2 + 2]."""
    obs0 = obs0.astype(jnp.float32)
    M, K = obs0.shape
    N = params0.shape[0] // (K + 1)
    x_km = obs0.T                                               # [K, M] lane-dense
    y = pl.pallas_call(
        functools.partial(_lin0_kernel, K=K, N=N),
        out_shape=jax.ShapeDtypeStruct((N, M), jnp.float32),
        in_specs=[pl.BlockSpec(memory_space=pltpu.MemorySpace.SMEM),
                  pl.BlockSpec(memory_space=pltpu.MemorySpace.VMEM)],
        out_specs=pl.BlockSpec(memory_space=pltpu.MemorySpace.VMEM),
    )(params0, x_km)
    return y.T                                                  # [M, N]


@jax.jit
def proposal_lin_t(prev, obs_t, params_t):
    """loc = prev @ Wp^T + obs_t @ Wo^T + b  (== cat([prev, obs], -1) @ Wt^T + b).

    prev: [B, P, 6], obs_t: [B, 2], params_t: f32[6*2 + 2*2 + 2]  -> [B, P, 2].
    """
    prev = prev.astype(jnp.float32)
    obs_t = obs_t.astype(jnp.float32)
    B, P, Kp = prev.shape
    Ko = obs_t.shape[-1]
    N = params_t.shape[0] // (Kp + Ko + 1)
    x_km = prev.reshape(B * P, Kp).T                            # [Kp, B*P] lane-dense
    obs_flat = obs_t.reshape(-1)                                # [B*Ko] -> SMEM scalars
    y = pl.pallas_call(
        functools.partial(_lin_t_kernel, B=B, P=P, Kp=Kp, Ko=Ko, N=N),
        out_shape=jax.ShapeDtypeStruct((N, B * P), jnp.float32),
        in_specs=[pl.BlockSpec(memory_space=pltpu.MemorySpace.SMEM),
                  pl.BlockSpec(memory_space=pltpu.MemorySpace.SMEM),
                  pl.BlockSpec(memory_space=pltpu.MemorySpace.VMEM)],
        out_specs=pl.BlockSpec(memory_space=pltpu.MemorySpace.VMEM),
    )(params_t, obs_flat, x_km)
    return y.T.reshape(B, P, N)                                 # [B, P, N]


# ----------------------------------------------------------------------------- module
def _torch_linear_init(key, in_features, out_features):
    """PyTorch nn.Linear default init: U(-1/sqrt(fan_in), 1/sqrt(fan_in))."""
    kw, kb = jax.random.split(key)
    bound = 1.0 / jnp.sqrt(jnp.float32(in_features))
    w = jax.random.uniform(kw, (out_features, in_features), jnp.float32, -bound, bound)
    b = jax.random.uniform(kb, (out_features,), jnp.float32, -bound, bound)
    return w, b


class Proposal:
    def __init__(self, scale_0, scale_t, key):
        self.scale_0 = float(scale_0)
        self.scale_t = float(scale_t)   # unused in forward, matching the original module
        k0, kt = jax.random.split(key)
        self.w0, self.b0 = _torch_linear_init(k0, 6, 2)   # lin_0 : 6 -> 2
        self.wt, self.bt = _torch_linear_init(kt, 8, 2)   # lin_t : 8 -> 2
        # Packed kernel params (one flat SMEM operand each): W^T row-major, then bias.
        # lin_t is split into prev-latent / observation column blocks so the concat is
        # fused away in the kernel.
        self.params0 = jnp.concatenate([self.w0.T.reshape(-1), self.b0])   # f32[14]
        self.params_t = jnp.concatenate([self.wt[:, :6].T.reshape(-1),     # wp: f32[12]
                                         self.wt[:, 6:].T.reshape(-1),     # wo: f32[4]
                                         self.bt])                         # b : f32[2]

    def forward(self, previous_latents=None, time=None, observations=None):
        if time == 0:
            loc = proposal_lin0(observations[0], self.params0)             # [batch, 2]
            return {"dist": "Normal", "loc": loc, "scale": self.scale_0,
                    "batch_shape_mode": "BATCH_EXPANDED"}
        loc = proposal_lin_t(previous_latents[-1], observations[time],
                             self.params_t)                                # [batch, P, 2]
        # Original module uses scale_0 for t>0 as well (scale_t unused) -- preserved.
        return {"dist": "Normal", "loc": loc, "scale": self.scale_0,
                "batch_shape_mode": "FULLY_EXPANDED"}


# ----------------------------------------------------------------------------- main
if __name__ == "__main__":
    key = jax.random.PRNGKey(0)
    k_mod, k_obs0, k_obs1, k_lat = jax.random.split(key, 4)

    batch = 4
    num_particles = 16
    latent_dim = 6
    obs_dim = 2

    proposal = Proposal(scale_0=0.1, scale_t=0.2, key=k_mod)

    observations = [
        jax.random.normal(k_obs0, (batch, 6), jnp.float32),        # obs at t=0
        jax.random.normal(k_obs1, (batch, obs_dim), jnp.float32),  # obs at t=1
    ]
    previous_latents = [
        jax.random.normal(k_lat, (batch, num_particles, latent_dim), jnp.float32)
    ]

    # time == 0 branch
    out0 = proposal.forward(previous_latents=None, time=0, observations=observations)
    jax.block_until_ready(out0["loc"])
    assert out0["loc"].shape == (batch, 2)

    # time > 0 branch
    out1 = proposal.forward(previous_latents=previous_latents, time=1,
                            observations=observations)
    jax.block_until_ready(out1["loc"])
    assert out1["loc"].shape == (batch, num_particles, 2)

    # reference check against plain-JAX affine transform (full concat formulation)
    ref0 = observations[0] @ proposal.w0.T + proposal.b0
    feat = jnp.concatenate(
        [previous_latents[-1],
         jnp.broadcast_to(observations[1][:, None, :],
                          (batch, num_particles, obs_dim))],
        axis=-1)
    ref1 = (feat.reshape(-1, 8) @ proposal.wt.T + proposal.bt).reshape(
        batch, num_particles, 2)
    assert jnp.allclose(out0["loc"], ref0, atol=1e-5)
    assert jnp.allclose(out1["loc"], ref1, atol=1e-5)

    print("KERNEL_OK")
</pallas_src>

<mosaic_0001>
module attributes {stable_mosaic.version = 11 : i64} {
  func.func @_lin0_kernel(%arg0: memref<14xf32, #tpu.memory_space<smem>>, %arg1: memref<6x4xf32, #tpu.memory_space<vmem>>, %arg2: memref<2x4xf32, #tpu.memory_space<vmem>>) attributes {dimension_semantics = [], scalar_prefetch = 0 : i64, scratch_operands = 0 : i64, tpu.core_type = #tpu.core_type<tc>} {
    %c0 = arith.constant 0 : index
    %0 = memref.load %arg0[%c0] : memref<14xf32, #tpu.memory_space<smem>>
    %c0_0 = arith.constant 0 : index
    %c0_1 = arith.constant 0 : index
    %1 = vector.load %arg1[%c0_0, %c0_1] : memref<6x4xf32, #tpu.memory_space<vmem>>, vector<1x4xf32>
    %2 = vector.broadcast %0 : f32 to vector<1x4xf32>
    %3 = arith.mulf %2, %1 : vector<1x4xf32>
    %c2 = arith.constant 2 : index
    %4 = memref.load %arg0[%c2] : memref<14xf32, #tpu.memory_space<smem>>
    %c1 = arith.constant 1 : index
    %c0_2 = arith.constant 0 : index
    %5 = vector.load %arg1[%c1, %c0_2] : memref<6x4xf32, #tpu.memory_space<vmem>>, vector<1x4xf32>
    %6 = vector.broadcast %4 : f32 to vector<1x4xf32>
    %7 = arith.mulf %6, %5 : vector<1x4xf32>
    %8 = arith.addf %3, %7 : vector<1x4xf32>
    %c4 = arith.constant 4 : index
    %9 = memref.load %arg0[%c4] : memref<14xf32, #tpu.memory_space<smem>>
    %c2_3 = arith.constant 2 : index
    %c0_4 = arith.constant 0 : index
    %10 = vector.load %arg1[%c2_3, %c0_4] : memref<6x4xf32, #tpu.memory_space<vmem>>, vector<1x4xf32>
    %11 = vector.broadcast %9 : f32 to vector<1x4xf32>
    %12 = arith.mulf %11, %10 : vector<1x4xf32>
    %13 = arith.addf %8, %12 : vector<1x4xf32>
    %c6 = arith.constant 6 : index
    %14 = memref.load %arg0[%c6] : memref<14xf32, #tpu.memory_space<smem>>
    %c3 = arith.constant 3 : index
    %c0_5 = arith.constant 0 : index
    %15 = vector.load %arg1[%c3, %c0_5] : memref<6x4xf32, #tpu.memory_space<vmem>>, vector<1x4xf32>
    %16 = vector.broadcast %14 : f32 to vector<1x4xf32>
    %17 = arith.mulf %16, %15 : vector<1x4xf32>
    %18 = arith.addf %13, %17 : vector<1x4xf32>
    %c8 = arith.constant 8 : index
    %19 = memref.load %arg0[%c8] : memref<14xf32, #tpu.memory_space<smem>>
    %c4_6 = arith.constant 4 : index
    %c0_7 = arith.constant 0 : index
    %20 = vector.load %arg1[%c4_6, %c0_7] : memref<6x4xf32, #tpu.memory_space<vmem>>, vector<1x4xf32>
    %21 = vector.broadcast %19 : f32 to vector<1x4xf32>
    %22 = arith.mulf %21, %20 : vector<1x4xf32>
    %23 = arith.addf %18, %22 : vector<1x4xf32>
    %c10 = arith.constant 10 : index
    %24 = memref.load %arg0[%c10] : memref<14xf32, #tpu.memory_space<smem>>
    %c5 = arith.constant 5 : index
    %c0_8 = arith.constant 0 : index
    %25 = vector.load %arg1[%c5, %c0_8] : memref<6x4xf32, #tpu.memory_space<vmem>>, vector<1x4xf32>
    %26 = vector.broadcast %24 : f32 to vector<1x4xf32>
    %27 = arith.mulf %26, %25 : vector<1x4xf32>
    %28 = arith.addf %23, %27 : vector<1x4xf32>
    %c12 = arith.constant 12 : index
    %29 = memref.load %arg0[%c12] : memref<14xf32, #tpu.memory_space<smem>>
    %30 = vector.broadcast %29 : f32 to vector<1x4xf32>
    %31 = arith.addf %28, %30 : vector<1x4xf32>
    %c1_9 = arith.constant 1 : index
    %32 = memref.load %arg0[%c1_9] : memref<14xf32, #tpu.memory_space<smem>>
    %c0_10 = arith.constant 0 : index
    %c0_11 = arith.constant 0 : index
    %33 = vector.load %arg1[%c0_10, %c0_11] : memref<6x4xf32, #tpu.memory_space<vmem>>, vector<1x4xf32>
    %34 = vector.broadcast %32 : f32 to vector<1x4xf32>
    %35 = arith.mulf %34, %33 : vector<1x4xf32>
    %c3_12 = arith.constant 3 : index
    %36 = memref.load %arg0[%c3_12] : memref<14xf32, #tpu.memory_space<smem>>
    %c1_13 = arith.constant 1 : index
    %c0_14 = arith.constant 0 : index
    %37 = vector.load %arg1[%c1_13, %c0_14] : memref<6x4xf32, #tpu.memory_space<vmem>>, vector<1x4xf32>
    %38 = vector.broadcast %36 : f32 to vector<1x4xf32>
    %39 = arith.mulf %38, %37 : vector<1x4xf32>
    %40 = arith.addf %35, %39 : vector<1x4xf32>
    %c5_15 = arith.constant 5 : index
    %41 = memref.load %arg0[%c5_15] : memref<14xf32, #tpu.memory_space<smem>>
    %c2_16 = arith.constant 2 : index
    %c0_17 = arith.constant 0 : index
    %42 = vector.load %arg1[%c2_16, %c0_17] : memref<6x4xf32, #tpu.memory_space<vmem>>, vector<1x4xf32>
    %43 = vector.broadcast %41 : f32 to vector<1x4xf32>
    %44 = arith.mulf %43, %42 : vector<1x4xf32>
    %45 = arith.addf %40, %44 : vector<1x4xf32>
    %c7 = arith.constant 7 : index
    %46 = memref.load %arg0[%c7] : memref<14xf32, #tpu.memory_space<smem>>
    %c3_18 = arith.constant 3 : index
    %c0_19 = arith.constant 0 : index
    %47 = vector.load %arg1[%c3_18, %c0_19] : memref<6x4xf32, #tpu.memory_space<vmem>>, vector<1x4xf32>
    %48 = vector.broadcast %46 : f32 to vector<1x4xf32>
    %49 = arith.mulf %48, %47 : vector<1x4xf32>
    %50 = arith.addf %45, %49 : vector<1x4xf32>
    %c9 = arith.constant 9 : index
    %51 = memref.load %arg0[%c9] : memref<14xf32, #tpu.memory_space<smem>>
    %c4_20 = arith.constant 4 : index
    %c0_21 = arith.constant 0 : index
    %52 = vector.load %arg1[%c4_20, %c0_21] : memref<6x4xf32, #tpu.memory_space<vmem>>, vector<1x4xf32>
    %53 = vector.broadcast %51 : f32 to vector<1x4xf32>
    %54 = arith.mulf %53, %52 : vector<1x4xf32>
    %55 = arith.addf %50, %54 : vector<1x4xf32>
    %c11 = arith.constant 11 : index
    %56 = memref.load %arg0[%c11] : memref<14xf32, #tpu.memory_space<smem>>
    %c5_22 = arith.constant 5 : index
    %c0_23 = arith.constant 0 : index
    %57 = vector.load %arg1[%c5_22, %c0_23] : memref<6x4xf32, #tpu.memory_space<vmem>>, vector<1x4xf32>
    %58 = vector.broadcast %56 : f32 to vector<1x4xf32>
    %59 = arith.mulf %58, %57 : vector<1x4xf32>
    %60 = arith.addf %55, %59 : vector<1x4xf32>
    %c13 = arith.constant 13 : index
    %61 = memref.load %arg0[%c13] : memref<14xf32, #tpu.memory_space<smem>>
    %62 = vector.broadcast %61 : f32 to vector<1x4xf32>
    %63 = arith.addf %60, %62 : vector<1x4xf32>
    %64 = tpu.concatenate %31, %63 in 0 : vector<1x4xf32>, vector<1x4xf32> -> vector<2x4xf32>
    %c0_24 = arith.constant 0 : index
    %c0_25 = arith.constant 0 : index
    %65 = vector.load %arg2[%c0_24, %c0_25] : memref<2x4xf32, #tpu.memory_space<vmem>>, vector<2x4xf32>
    tpu.vector_store %arg2[%c0_24, %c0_25], %64 {strides = array<i32>} : memref<2x4xf32, #tpu.memory_space<vmem>>, vector<2x4xf32>,
    return
  }
}

</mosaic_0001>

<bundles_post_ra>
// kernel: proposal_lin0.1
= control target key start
LH: loop header
LB: loop body
LE: loop exit
PB: predicated region body
PF: predicated region fallthrough
CT: control target
= control target key end

     0   :  { %7 = vsyncpa [#allocation4], 0  ;;  %s200_s0 = inlined_call_operand.vmem [shape: f32[14], index: 0, kind: input, shape index: {}]   ;;  %s201_s1 = inlined_call_operand.vmem [shape: f32[6,4], index: 1, kind: input, shape index: {}]   ;;  %s202_s2 = inlined_call_operand.hbm [shape: f32[2,4], index: 2, kind: output, shape index: {}]  }
   0x1   :  { %8 = vsyncpa [#allocation3], 0  ;;  %s15_s11 = sshll.u32 %s200_s0, 4  ;;  %s16_s11 = int_to_ptr.vmem [resolvable:$true] %s15_s11 }
   0x2   :  { %s120_s12 = scalar_lea.vmem %s16_s11, 16  ;;  %p125_p1 = scmp.lt.s32.totalorder %s16_s11, %s16_s11 }
   0x3   :  { %p121_p0 = scmp.ne.s32.totalorder %s16_s11, %s120_s12  ;;  %p126_p2 = scmp.lt.s32.totalorder %s120_s12, %s120_s12 }
   0x5   :  { %p127_p3 = por %p126_p2, %p125_p1 }
   0x7   :  { %p128_p4 = pnand %p127_p3, %p121_p0 }
   0x9   :  { %131 = shalt.err (!%p128_p4)
}
   0xa   :  { %s156_s13 = smov [#allocation2]  }
   0xb   :  { %18 = dma.vmem_to_smem %s16_s11, 16, %s156_s13, [#allocation4]  }
   0xc   :  { %152 = dma.done.wait [#allocation4], 16  }
   0xd   :  { %153 = vsyncadd [#allocation4], 4294967280 }
   0xe   :  { %24 = sfence }
   0xf   :  { %s25_s14 = sld [smem:[#allocation2]]  ;;  %v26_v0 = vld [vmem:[%s201_s1] sm:$0x1]  ;;  %v30_v3 = vld [vmem:[%s201_s1 + $0x1] sm:$0x1]  ;;  %s157_s11 = smov [#allocation5]  }
  0x10   :  { %s105_s15 = sld [smem:[#allocation2 + $0x2]]  ;;  %v35_v6 = vld [vmem:[%s201_s1 + $0x2] sm:$0x1]  ;;  %v40_v11 = vld [vmem:[%s201_s1 + $0x3] sm:$0x1]  ;;  %s96_s12 = sshll.u32 %s157_s11, 4  ;;  %s97_s12 = int_to_ptr.vmem [resolvable:$true] %s96_s12 }
  0x11   :  { %s106_s16 = sld [smem:[#allocation2 + $0x4]]  ;;  %v45_v16 = vld [vmem:[%s201_s1 + $0x4] sm:$0x1]  ;;  %v50_v29 = vld [vmem:[%s201_s1 + $0x5] sm:$0x1]  ;;  %vm86_vm0 = vcmask 1040384   ;;  %p137_p6 = scmp.lt.s32.totalorder %s97_s12, %s97_s12 }
  0x12   :  { %s107_s17 = sld [smem:[#allocation2 + $0x6]]  ;;  %vm88_vm1 = vcmask 25600   ;;  %s132_s1 = scalar_lea.vmem %s97_s12, 32 }
  0x13   :  { %s108_s18 = sld [smem:[#allocation2 + $0x8]]  ;;  %p133_p5 = scmp.ne.s32.totalorder %s97_s12, %s132_s1 }
  0x14   :  { %s179_s20 = sld [smem:[#allocation2 + $0xa]]  ;;  %p138_p7 = scmp.lt.s32.totalorder %s132_s1, %s132_s1 }
  0x15   :  { %v27_v1 = vstv %s25_s14  ;;  %s111_s23 = sld [smem:[#allocation2 + $0x1]] }
  0x16   :  { %v28_v2 = vmul.f32 %v27_v1, %v26_v0  ;;  %v31_v4 = vstv %s105_s15  ;;  %s112_s26 = sld [smem:[#allocation2 + $0x3]]  ;;  %p139_p8 = por %p138_p7, %p137_p6 }
  0x17   :  { %v32_v5 = vmul.f32 %v31_v4, %v30_v3  ;;  %v36_v7 = vstv %s106_s16  ;;  %s113_s27 = sld [smem:[#allocation2 + $0x5]] }
  0x18   :  { %v37_v8 = vmul.f32 %v36_v7, %v35_v6  ;;  %v41_v9 = vstv %s107_s17  ;;  %s114_s30 = sld [smem:[#allocation2 + $0x7]]  ;;  %p140_p9 = pnand %p139_p8, %p133_p5 }
  0x19   :  { %v33_v10 = vadd.f32 %v32_v5, %v28_v2  ;;  %v42_v12 = vmul.f32 %v41_v9, %v40_v11  ;;  %s115_s3 = sld [smem:[#allocation2 + $0x9]]  ;;  %v46_v14 = vstv %s108_s18 }
  0x1a   :  { %s116_s4 = sld [smem:[#allocation2 + $0xb]]  ;;  %v47_v20 = vmul.f32 %v46_v14, %v45_v16  ;;  %v51_v23 = vstv %s179_s20 }
  0x1b   :  { %v38_v13 = vadd.f32 %v37_v8, %v33_v10  ;;  %v58_v15 = vstv %s111_s23  ;;  %s110_s7 = sld [smem:[#allocation2 + $0xc]]  ;;  %v52_v32 = vmul.f32 %v51_v23, %v50_v29 }
  0x1c   :  { %v59_v17 = vmul.f32 %v58_v15, %v26_v0  ;;  %v61_v18 = vstv %s112_s26  ;;  %s117_s8 = sld [smem:[#allocation2 + $0xd]] }
  0x1d   :  { %v43_v19 = vadd.f32 %v42_v12, %v38_v13  ;;  %v62_v21 = vmul.f32 %v61_v18, %v30_v3  ;;  %v65_v22 = vstv %s113_s27 }
  0x1e   :  { %v66_v24 = vmul.f32 %v65_v22, %v35_v6  ;;  %v69_v25 = vstv %s114_s30 }
  0x1f   :  { %v63_v26 = vadd.f32 %v62_v21, %v59_v17  ;;  %v70_v27 = vmul.f32 %v69_v25, %v40_v11  ;;  %v73_v28 = vstv %s115_s3  ;;  %v48_v31 = vadd.f32 %v47_v20, %v43_v19 }
  0x20   :  { %v77_v30 = vstv %s116_s4  ;;  %v74_v34 = vmul.f32 %v73_v28, %v45_v16 }
  0x21   :  { %v67_v33 = vadd.f32 %v66_v24, %v63_v26  ;;  %v78_v36 = vmul.f32 %v77_v30, %v50_v29  ;;  %v53_v37 = vadd.f32 %v52_v32, %v48_v31  ;;  %v55_v39 = vstv %s110_s7 }
  0x22   :  { %v81_v40 = vstv %s117_s8 }
  0x23   :  { %v71_v35 = vadd.f32 %v70_v27, %v67_v33  ;;  %v56_v42 = vadd.f32 %v55_v39, %v53_v37 }
  0x25   :  { %v75_v38 = vadd.f32 %v74_v34, %v71_v35 }
  0x27   :  { %v79_v41 = vadd.f32 %v78_v36, %v75_v38 }
  0x29   :  { %v82_v43 = vadd.f32 %v81_v40, %v79_v41 }
  0x2b   :  { %v84_v44 = vrot.slane %v82_v43, 7 }
  0x2d   :  { %v87_v45 = vsel %vm86_vm0, %v56_v42, %v84_v44 }
  0x2e   :  { %89 = vst.msk [vmem:[#allocation5] sm:$0x3] %vm88_vm1, %v87_v45 }
  0x2f   :  { %143 = shalt.err (!%p140_p9)
}
  0x30   :  { %99 = dma.vmem_to_hbm [thread:$0]  %s97_s12, 32, %s202_s2, [#allocation3]  }
  0x31   :  { %154 = dma.done.wait [#allocation3], 32  }
  0x32   :  { %155 = vsyncadd [#allocation3], 4294967264 }
  0x33   :  { %103 = vsyncpa [#allocation3], 1 }
  0x34   :  { %104 = vsyncpa [#allocation4], 1 }

</bundles_post_ra>
